<compile_context>
chip_gen: v7x
topology: tpu7x:2x2x1
jax: 0.10.0
libtpu: 0.0.40
codegen_flags: <defaults>
</compile_context>

<pallas_src>
import jax
import jax.numpy as jnp
from jax.experimental import pallas as pl
from jax.experimental.pallas import tpu as pltpu

EPS = 1e-5
KH = KW = 3
LANE = 128


def _round_up(x, m):
    return (x + m - 1) // m * m


def _vmem_limit_bytes():
    cap = 128 * 1024 * 1024
    try:
        cap = int(pltpu.get_tpu_info().vmem_capacity_bytes)
    except Exception:
        pass
    # ~3/4 of physical VMEM, capped: ~48 MiB on v7x (64 MiB), ~96 MiB on v5e/v6e.
    return int(min(cap * 3 // 4, 100 * 1024 * 1024))


def _pick_row_tile(h, w, target_rows=1024):
    """Largest th | h with (th*w) a multiple of 128 and th*w <= target_rows."""
    best = None
    for th in range(1, h + 1):
        if h % th:
            continue
        rows = th * w
        if rows % LANE == 0 and rows <= target_rows:
            best = th
    return best if best is not None else h  # full image block is always legal


def _pick_pass2_tile(n, h, w, cout_p, budget_bytes=8 << 20):
    """Pass 2 is elementwise/mem-bound: pick the biggest legal block that fits
    the budget, but keep >= 2 grid steps when possible (v7x megacore)."""
    cands = [t for t in range(1, h + 1)
             if h % t == 0 and ((t * w) % LANE == 0 or t == h)]
    fit = [t for t in cands if t * w * cout_p * 2 <= budget_bytes] or [min(cands)]
    two_step = [t for t in fit if n * (h // t) >= 2]
    return max(two_step) if two_step else max(fit)


def _conv_kernel(x_ref, w_ref, b_ref, y_ref, stats_ref):
    # x_ref    : (1, rows, K_pad)     bf16  im2col'd pixels for this row tile
    # w_ref    : (K_pad, Cout_p)      bf16
    # b_ref    : (1, Cout_p)          f32
    # y_ref    : (1, rows, Cout_p)    bf16  conv + bias (pre-BN)
    # stats_ref: (1, 1, 2, Cout_p)    f32   per-tile [sum, sum_sq]
    x = x_ref[0]                                                  # (rows, K_pad)
    acc = jnp.dot(x, w_ref[...], preferred_element_type=jnp.float32)
    y = acc + b_ref[...]                                          # (rows, Cout_p) f32
    y_ref[...] = y.astype(y_ref.dtype)[None]                      # bf16 store
    s = jnp.sum(y, axis=0, keepdims=True)                         # stats from f32
    sq = jnp.sum(y * y, axis=0, keepdims=True)
    stats_ref[...] = jnp.concatenate([s, sq], axis=0)[None, None]


def _bn_relu_kernel(y_ref, scale_ref, shift_ref, o_ref):
    # y_ref    : (1, rows, Cout_p) bf16
    # scale/shift: (1, Cout_p)     f32
    # o_ref    : (1, Cout, rows)   f32   (channels-first, unpadded)
    cout = o_ref.shape[1]
    y = y_ref[0].astype(jnp.float32)                              # (rows, Cout_p)
    z = jnp.maximum(y * scale_ref[...] + shift_ref[...], 0.0)
    zt = z.T                                                      # (Cout_p, rows)
    o_ref[...] = zt[:cout, :][None]


def conv_block(x_nchw, w_oihw, b, gamma, beta, *, row_tile=None):
    """Pallas ConvBlock forward. x_nchw: (N, Cin, H, W) -> (N, Cout, H, W)."""
    n, cin, hh, ww = x_nchw.shape
    cout = w_oihw.shape[0]
    k = KH * KW * cin
    k_pad = _round_up(k, 16)
    cout_p = _round_up(cout, LANE)

    th = row_tile if row_tile is not None else _pick_row_tile(hh, ww)
    assert hh % th == 0 and ((th * ww) % LANE == 0 or th == hh), (
        "row_tile must divide H and give 128-aligned row blocks")
    ht = hh // th
    rows1 = th * ww

    th2 = _pick_pass2_tile(n, hh, ww, cout_p)
    ht2 = hh // th2
    rows2 = th2 * ww

    # ---- glue: im2col fold of the 3x3 taps into the contraction axis -------
    x_nhwc = jnp.transpose(x_nchw, (0, 2, 3, 1)).astype(jnp.float32)
    xpad = jnp.pad(x_nhwc, ((0, 0), (1, 1), (1, 1), (0, 0)))
    taps = [xpad[:, dh:dh + hh, dw:dw + ww, :]
            for dh in range(KH) for dw in range(KW)]
    x_col = jnp.concatenate(taps, axis=-1)                       # (N, H, W, 9*Cin)
    x_col = jnp.pad(x_col, ((0, 0), (0, 0), (0, 0), (0, k_pad - k)))
    x_col = x_col.reshape(n, hh * ww, k_pad).astype(jnp.bfloat16)

    w_col = jnp.transpose(w_oihw, (2, 3, 1, 0)).reshape(k, cout).astype(jnp.float32)
    w_col = jnp.pad(w_col, ((0, k_pad - k), (0, cout_p - cout))).astype(jnp.bfloat16)

    b_p = jnp.pad(b.astype(jnp.float32), (0, cout_p - cout)).reshape(1, cout_p)
    gamma_p = jnp.pad(gamma.astype(jnp.float32), (0, cout_p - cout),
                      constant_values=1.0)
    beta_p = jnp.pad(beta.astype(jnp.float32), (0, cout_p - cout))

    cparams = pltpu.CompilerParams(
        dimension_semantics=("parallel", "parallel"),
        vmem_limit_bytes=_vmem_limit_bytes(),
    )

    # ---- pass 1: conv (one MXU matmul per tile) + bias, per-tile moments ----
    y, stats = pl.pallas_call(
        _conv_kernel,
        grid=(n, ht),
        in_specs=[
            pl.BlockSpec((1, rows1, k_pad), lambda ni, hi: (ni, hi, 0)),
            pl.BlockSpec((k_pad, cout_p), lambda ni, hi: (0, 0)),
            pl.BlockSpec((1, cout_p), lambda ni, hi: (0, 0)),
        ],
        out_specs=[
            pl.BlockSpec((1, rows1, cout_p), lambda ni, hi: (ni, hi, 0)),
            pl.BlockSpec((1, 1, 2, cout_p), lambda ni, hi: (ni, hi, 0, 0)),
        ],
        out_shape=[
            jax.ShapeDtypeStruct((n, hh * ww, cout_p), jnp.bfloat16),
            jax.ShapeDtypeStruct((n, ht, 2, cout_p), jnp.float32),
        ],
        compiler_params=cparams,
    )(x_col, w_col, b_p)

    # ---- batch statistics (tiny (Cout_p,) vectors, plain JAX) ---------------
    # NOTE: E[y^2]-E[y]^2 in f32 can cancel at production scales; use
    # shifted/Welford sums there.
    count = float(n * hh * ww)
    ssum = jnp.sum(stats[:, :, 0, :], axis=(0, 1))
    ssq = jnp.sum(stats[:, :, 1, :], axis=(0, 1))
    mean = ssum / count
    var = jnp.maximum(ssq / count - mean * mean, 0.0)   # biased batch variance
    inv = jax.lax.rsqrt(var + EPS)
    scale = (gamma_p * inv).reshape(1, cout_p)
    shift = (beta_p - mean * gamma_p * inv).reshape(1, cout_p)

    # ---- pass 2: BN apply + ReLU, writes unpadded channels-first output -----
    out = pl.pallas_call(
        _bn_relu_kernel,
        grid=(n, ht2),
        in_specs=[
            pl.BlockSpec((1, rows2, cout_p), lambda ni, hj: (ni, hj, 0)),
            pl.BlockSpec((1, cout_p), lambda ni, hj: (0, 0)),
            pl.BlockSpec((1, cout_p), lambda ni, hj: (0, 0)),
        ],
        out_specs=pl.BlockSpec((1, cout, rows2), lambda ni, hj: (ni, 0, hj)),
        out_shape=jax.ShapeDtypeStruct((n, cout, hh * ww), jnp.float32),
        compiler_params=cparams,
    )(y, scale, shift)

    return out.reshape(n, cout, hh, ww)   # free reshape, already NCHW order


def _reference(x_nchw, w_oihw, b, gamma, beta):
    """Pure-JAX reference mirroring kernel precision (bf16 conv inputs, f32
    stats, bf16-rounded pre-BN activation)."""
    xq = x_nchw.astype(jnp.bfloat16).astype(jnp.float32)
    wq = w_oihw.astype(jnp.bfloat16).astype(jnp.float32)
    y = jax.lax.conv_general_dilated(
        xq, wq, window_strides=(1, 1), padding=((1, 1), (1, 1)),
        dimension_numbers=("NCHW", "OIHW", "NCHW"))
    y = y + b.reshape(1, -1, 1, 1)
    mean = jnp.mean(y, axis=(0, 2, 3), keepdims=True)
    var = jnp.mean((y - mean) ** 2, axis=(0, 2, 3), keepdims=True)
    yq = y.astype(jnp.bfloat16).astype(jnp.float32)   # kernel stores y in bf16
    z = (yq - mean) * jax.lax.rsqrt(var + EPS)
    z = z * gamma.reshape(1, -1, 1, 1) + beta.reshape(1, -1, 1, 1)
    return jnp.maximum(z, 0.0)


if __name__ == "__main__":
    # Small, deterministic example: batch=2, in_c=4, out_c=8, spatial=16.
    N, IN_C, OUT_C, H, W = 2, 4, 8, 16, 16
    key = jax.random.PRNGKey(0)
    kx, kw, kb, kg, kbt = jax.random.split(key, 5)

    x = jax.random.normal(kx, (N, IN_C, H, W), dtype=jnp.float32)
    conv_w = 0.1 * jax.random.normal(kw, (OUT_C, IN_C, KH, KW), dtype=jnp.float32)
    conv_b = 0.1 * jax.random.normal(kb, (OUT_C,), dtype=jnp.float32)
    bn_gamma = 1.0 + 0.1 * jax.random.normal(kg, (OUT_C,), dtype=jnp.float32)
    bn_beta = 0.1 * jax.random.normal(kbt, (OUT_C,), dtype=jnp.float32)

    # row_tile=8 -> pass-1 grid (N=2, HT=2): exercises H tiling and the
    # multi-tile batch-stat partial reduction; pass 2 fuses to whole images.
    out = conv_block(x, conv_w, conv_b, bn_gamma, bn_beta, row_tile=8)
    out = jax.block_until_ready(out)

    ref = jax.block_until_ready(_reference(x, conv_w, conv_b, bn_gamma, bn_beta))
    assert out.shape == (N, OUT_C, H, W)
    err = float(jnp.max(jnp.abs(out - ref)))
    assert jnp.allclose(out, ref, atol=1e-2, rtol=1e-2), (
        "mismatch vs reference, max abs err = %e" % err)

    print("KERNEL_OK")
</pallas_src>

<mosaic_0001>
module attributes {stable_mosaic.version = 11 : i64} {
  func.func @_conv_kernel(%arg0: i32, %arg1: i32, %arg2: memref<1x128x48xbf16, #tpu.memory_space<vmem>>, %arg3: memref<48x128xbf16, #tpu.memory_space<vmem>>, %arg4: memref<1x128xf32, #tpu.memory_space<vmem>>, %arg5: memref<1x128x128xbf16, #tpu.memory_space<vmem>>, %arg6: memref<1x1x2x128xf32, #tpu.memory_space<vmem>>) attributes {dimension_semantics = [#tpu.dimension_semantics<parallel>, #tpu.dimension_semantics<parallel>], iteration_bounds = array<i64: 2, 2>, scalar_prefetch = 0 : i64, scratch_operands = 0 : i64, tpu.core_type = #tpu.core_type<tc>, window_params = [{transform_indices = @transform_0, window_bounds = array<i64: 1, 128, 48>}, {pipeline_mode = #tpu.pipeline_mode<synchronous>, transform_indices = @transform_1, window_bounds = array<i64: 48, 128>}, {pipeline_mode = #tpu.pipeline_mode<synchronous>, transform_indices = @transform_2, window_bounds = array<i64: 1, 128>}, {transform_indices = @transform_3, window_bounds = array<i64: 1, 128, 128>}, {transform_indices = @transform_4, window_bounds = array<i64: 1, 1, 2, 128>}]} {
    %c0 = arith.constant 0 : index
    %c0_0 = arith.constant 0 : index
    %c0_1 = arith.constant 0 : index
    %0 = vector.load %arg2[%c0, %c0_0, %c0_1] : memref<1x128x48xbf16, #tpu.memory_space<vmem>>, vector<1x128x48xbf16>
    %1 = vector.shape_cast %0 : vector<1x128x48xbf16> to vector<128x48xbf16>
    %c0_2 = arith.constant 0 : index
    %c0_3 = arith.constant 0 : index
    %2 = vector.load %arg3[%c0_2, %c0_3] : memref<48x128xbf16, #tpu.memory_space<vmem>>, vector<48x128xbf16>
    %cst = arith.constant dense<0.000000e+00> : vector<128x128xf32>
    %3 = tpu.matmul %1, %2, %cst {dimension_numbers = #tpu.dot_dimension_numbers<[1], [0], [0], [1], [0, 0, 1, 1], [], []>} : vector<128x48xbf16>, vector<48x128xbf16>, vector<128x128xf32> -> vector<128x128xf32>
    %c0_4 = arith.constant 0 : index
    %c0_5 = arith.constant 0 : index
    %4 = vector.load %arg4[%c0_4, %c0_5] : memref<1x128xf32, #tpu.memory_space<vmem>>, vector<1x128xf32>
    %5 = vector.broadcast %4 : vector<1x128xf32> to vector<128x128xf32>
    %6 = arith.addf %3, %5 : vector<128x128xf32>
    %7 = arith.truncf %6 : vector<128x128xf32> to vector<128x128xbf16>
    %8 = vector.shape_cast %7 : vector<128x128xbf16> to vector<1x128x128xbf16>
    %c0_6 = arith.constant 0 : index
    %c0_7 = arith.constant 0 : index
    %c0_8 = arith.constant 0 : index
    %9 = vector.load %arg5[%c0_6, %c0_7, %c0_8] : memref<1x128x128xbf16, #tpu.memory_space<vmem>>, vector<1x128x128xbf16>
    tpu.vector_store %arg5[%c0_6, %c0_7, %c0_8], %8 {strides = array<i32>} : memref<1x128x128xbf16, #tpu.memory_space<vmem>>, vector<1x128x128xbf16>,
    %cst_9 = arith.constant dense<0.000000e+00> : vector<128xf32>
    %10 = vector.multi_reduction <add>, %6, %cst_9 [0] : vector<128x128xf32> to vector<128xf32>
    %11 = vector.shape_cast %10 : vector<128xf32> to vector<1x128xf32>
    %12 = arith.mulf %6, %6 : vector<128x128xf32>
    %cst_10 = arith.constant dense<0.000000e+00> : vector<128xf32>
    %13 = vector.multi_reduction <add>, %12, %cst_10 [0] : vector<128x128xf32> to vector<128xf32>
    %14 = vector.shape_cast %13 : vector<128xf32> to vector<1x128xf32>
    %15 = tpu.concatenate %11, %14 in 0 : vector<1x128xf32>, vector<1x128xf32> -> vector<2x128xf32>
    %16 = vector.shape_cast %15 : vector<2x128xf32> to vector<1x1x2x128xf32>
    %c0_11 = arith.constant 0 : index
    %c0_12 = arith.constant 0 : index
    %c0_13 = arith.constant 0 : index
    %c0_14 = arith.constant 0 : index
    %17 = vector.load %arg6[%c0_11, %c0_12, %c0_13, %c0_14] : memref<1x1x2x128xf32, #tpu.memory_space<vmem>>, vector<1x1x2x128xf32>
    tpu.vector_store %arg6[%c0_11, %c0_12, %c0_13, %c0_14], %16 {strides = array<i32>} : memref<1x1x2x128xf32, #tpu.memory_space<vmem>>, vector<1x1x2x128xf32>,
    return
  }
  func.func @transform_0(%arg0: i32, %arg1: i32) -> (i32, i32, i32) {
    %c0_i32 = arith.constant 0 : i32
    %c0_i32_0 = arith.constant 0 : i32
    return %arg0, %arg1, %c0_i32 : i32, i32, i32
  }
  func.func @transform_1(%arg0: i32, %arg1: i32) -> (i32, i32) {
    %c0_i32 = arith.constant 0 : i32
    %c0_i32_0 = arith.constant 0 : i32
    %c0_i32_1 = arith.constant 0 : i32
    return %c0_i32, %c0_i32_0 : i32, i32
  }
  func.func @transform_2(%arg0: i32, %arg1: i32) -> (i32, i32) {
    %c0_i32 = arith.constant 0 : i32
    %c0_i32_0 = arith.constant 0 : i32
    %c0_i32_1 = arith.constant 0 : i32
    return %c0_i32, %c0_i32_0 : i32, i32
  }
  func.func @transform_3(%arg0: i32, %arg1: i32) -> (i32, i32, i32) {
    %c0_i32 = arith.constant 0 : i32
    %c0_i32_0 = arith.constant 0 : i32
    return %arg0, %arg1, %c0_i32 : i32, i32, i32
  }
  func.func @transform_4(%arg0: i32, %arg1: i32) -> (i32, i32, i32, i32) {
    %c0_i32 = arith.constant 0 : i32
    %c0_i32_0 = arith.constant 0 : i32
    %c0_i32_1 = arith.constant 0 : i32
    return %arg0, %arg1, %c0_i32, %c0_i32_0 : i32, i32, i32, i32
  }
}

</mosaic_0001>

<bundles_post_ra>
// kernel: tpu_custom_call.1
= control target key start
LH: loop header
LB: loop body
LE: loop exit
PB: predicated region body
PF: predicated region fallthrough
CT: control target
= control target key end

     0   :  { %s1752_s0 = inlined_call_operand.hbm [shape: bf16[2,256,48], index: 0, kind: input, shape index: {}]   ;;  %s1753_s1 = inlined_call_operand.hbm [shape: bf16[48,128], index: 1, kind: input, shape index: {}]   ;;  %s1754_s2 = inlined_call_operand.hbm [shape: f32[1,128], index: 2, kind: input, shape index: {}]   ;;  %s1755_s3 = inlined_call_operand.hbm [shape: bf16[2,256,128], index: 3, kind: output, shape index: {0}]   ;;  %s1756_s4 = inlined_call_operand.hbm [shape: f32[2,2,2,128], index: 4, kind: output, shape index: {1}]  }
   0x1   :  { %1767 = sst [smem:[#allocation18_spill]] %s1753_s1 }
   0x2   :  { %1768 = sst [smem:[#allocation19_spill]] %s1754_s2 }
   0x3   :  { %1769 = sst [smem:[#allocation20_spill]] %s1756_s4 }
   0x4   :  { %10 = vsyncpa [#allocation3], 0 }
   0x5   :  { %12 = vsyncpa [#allocation3 + $0x1], 0 }
   0x6   :  { %13 = vsyncpa [#allocation6], 0 }
   0x7   :  { %14 = vsyncpa [#allocation4], 0 }
   0x8   :  { %16 = vsyncpa [#allocation4 + $0x1], 0 }
   0x9   :  { %17 = vsyncpa [#allocation10], 0 }
   0xa   :  { %19 = vsyncpa [#allocation10 + $0x1], 0  ;;  %s1344_s15 = smov 0   ;;  %s1346_s16 = smov 0  }
   0xb   :  { %s1348_s17 = smov 0   ;;  %s1350_s18 = smov 0  }
   0xc   :  { %s1352_s19 = smov 0   ;;  %s1354_s20 = smov 0  }
   0xd   :  { %s1356_s21 = smov 0   ;;  %s1358_s22 = smov 0  }
   0xe LB: > { %1770 = sst [smem:[#allocation15_spill]] %s1280_s15  ;;  %s806_s23 = sadd.s32 4294967295, %s1308_s22   ;;  %s1308_s22 = sphi %s1358_s22, %s25_s22   ;;  %s1304_s21 = sphi %s1356_s21, %s1801_s21   ;;  %s1300_s20 = sphi %s1354_s20, %s1800_s20   ;;  %s1296_s19 = sphi %s1352_s19, %s1799_s19   ;;  %s1292_s18 = sphi %s1350_s18, %s1798_s18   ;;  %s1288_s17 = sphi %s1348_s17, %s1797_s17   ;;  %s1284_s16 = sphi %s1346_s16, %s1796_s16   ;;  %s1280_s15 = sphi %s1344_s15, %s1795_s15  }
   0xf   : > { %s807_s24 = sadd.s32 4294967294, %s1308_s22   ;;  %p59_p0 = scmp.ne.s32.totalorder %s1284_s16, %s1280_s15 }
  0x10   : > { %p1388_p1 = scmp.eq.s32.totalorder %s806_s23, 0  ;;  %p1392_p2 = scmp.eq.s32.totalorder %s806_s23, 3 }
  0x11   : > { %p133_p3 = scmp.eq.s32.totalorder %s807_s24, 3  ;;  %p808_p5 = scmp.ge.s32.totalorder %s1308_s22, 1 }
  0x12   : > { %s1771_s25 = scalar_select %p1388_p1, 1, 0 }
  0x13   : > { %s1772_s26 = scalar_select %p1392_p2, 1, 0 }
  0x14   : > { %p1398_p4 = por %p1388_p1, %p59_p0  ;;  %p1403_p6 = por %p133_p3, %p59_p0 }
  0x15   : > { %p168_p7 = scmp.lt.s32.totalorder %s1308_s22, 5  ;;  %s1310_s30 = smov [#allocation5]  }
  0x16   : > { %s1773_s27 = scalar_select %p1398_p4, 1, 0 }
  0x17   : > { %s1774_s28 = scalar_select %p1403_p6, 1, 0 }
  0x18   : > { %p1408_p8 = pnand %p808_p5, %p168_p7  ;;  %s180_s5 = sshll.u32 %s1310_s30, 4  ;;  %s181_s5 = int_to_ptr.vmem [resolvable:$true] %s180_s5 }
  0x19   : > { %1775 = sst [smem:[#allocation16_spill]] %s1774_s28  ;;  %s1311_s7 = smov [#allocation7]  }
  0x1a   : > { %s1776_s29 = scalar_select %p1408_p8, 1, 0 }
  0x1b   : > { %p983_p9 = pneg %p1408_p8  ;;  %s194_s8 = sshll.u32 %s1311_s7, 4  ;;  %s1420_s8 = int_to_ptr.vmem [resolvable:$true] %s194_s8 }
  0x1c   : > { %s1778_s1 = sld [smem:[#allocation18_spill]] }
  0x1d   : > { %p1416_p10 = pnand %p983_p9, %p1388_p1 }
  0x1f   : > { %p1090_p12 = pneg %p1416_p10 }
  0x22   : > { %s1088_s11 = scalar_lea.hbm %s1778_s1, 384 }
  0x23   : > { %p1089_p11 = scmp.ne.s32.totalorder %s1778_s1, %s1088_s11  ;;  %p1095_p3 = scmp.lt.u32.totalorder %s1088_s11, %s1778_s1 }
  0x25   : > { %p1091_p13 = pnand %p1090_p12, %p1089_p11 }
  0x27   : > { %p1092_p0 = pneg %p1091_p13 }
  0x29   : > { %p1097_p5 = pnand %p1095_p3, %p1092_p0 }
  0x2b   : > { %1100 = shalt.err (!%p1097_p5)
}
  0x2c   : > { %s1101_s24 = scalar_lea.vmem %s181_s5, 384  ;;  %p1109_p1 = scmp.lt.s32.totalorder %s181_s5, %s181_s5 }
  0x2d   : > { %p1102_p7 = scmp.ne.s32.totalorder %s181_s5, %s1101_s24  ;;  %p1110_p4 = scmp.lt.s32.totalorder %s1101_s24, %s1101_s24 }
  0x2f   : > { %p1104_p9 = pnand %p1102_p7, %p1090_p12  ;;  %p1111_p8 = por %p1110_p4, %p1109_p1 }
  0x31   : > { %p1105_p6 = pneg %p1104_p9 }
  0x33   : > { %p1112_p2 = pnand %p1111_p8, %p1105_p6 }
  0x35   : > { %1115 = shalt.err (!%p1112_p2)
}
  0x36   : > { %s1762_s30 = smov 64   ;;  %s1763_s7 = smov 4  }
  0x37   : > { %986 = dma.hbm_to_vmem [thread:$0]  (!%p1416_p10), %s1778_s1, 384, %s181_s5, [#allocation6], %s1762_s30, %s1762_s30, %s1763_s7  }
  0x38   : > { %s1779_s2 = sld [smem:[#allocation19_spill]] }
  0x3e   : > { %s1116_s13 = scalar_lea.hbm %s1779_s2, 16 }
  0x3f   : > { %p1117_p1 = scmp.ne.s32.totalorder %s1779_s2, %s1116_s13  ;;  %p1123_p6 = scmp.lt.u32.totalorder %s1116_s13, %s1779_s2 }
  0x41   : > { %p1119_p2 = pnand %p1117_p1, %p1090_p12 }
  0x43   : > { %p1120_p4 = pneg %p1119_p2 }
  0x45   : > { %p1125_p8 = pnand %p1123_p6, %p1120_p4 }
  0x47   : > { %1128 = shalt.err (!%p1125_p8)
}
  0x48   : > { %s1129_s5 = scalar_lea.vmem %s1420_s8, 16  ;;  %s1136_s9 = scalar_lea.vmem %s1420_s8, 32 }
  0x49   : > { %p1130_p11 = scmp.ne.s32.totalorder %s1420_s8, %s1129_s5  ;;  %p1137_p3 = scmp.lt.s32.totalorder %s1420_s8, %s1420_s8 }
  0x4a   : > { %p1138_p5 = scmp.lt.s32.totalorder %s1136_s9, %s1129_s5 }
  0x4b   : > { %p1132_p13 = pnand %p1130_p11, %p1090_p12 }
  0x4c   : > { %p1139_p7 = por %p1138_p5, %p1137_p3 }
  0x4d   : > { %p1133_p0 = pneg %p1132_p13 }
  0x4f   : > { %p1140_p9 = pnand %p1139_p7, %p1133_p0 }
  0x51   : > { %1143 = shalt.err (!%p1140_p9)
}
  0x52   : > { %989 = dma.hbm_to_vmem [thread:$0]  (!%p1416_p10), %s1779_s2, 16, %s1420_s8, [#allocation6]  }
  0x53   : > { %s34_s11 = sadd.s32 1, %s1300_s20  ;;  %s37_s12 = sadd.s32 1, %s1304_s21 }
  0x54   : > { %p35_p12 = scmp.ge.s32.totalorder %s34_s11, 2  ;;  %s46_s6 = sadd.s32 1, %s1288_s17 }
  0x55   : > { %p53_p1 = scmp.ne.s32.totalorder %s1288_s17, %s1284_s16  ;;  %p54_p2 = scmp.eq.s32.totalorder %s1308_s22, 0 }
  0x56   : > { %s1803_s11 = smov (%p35_p12, %s34_s11), 0  ;;  %s1805_s12 = smov (!%p35_p12, %s37_s12), %s1304_s21 }
  0x57   : > { %1780 = sst [smem:[#allocation17_spill]] %s1803_s11  ;;  %s42_s13 = ssub.s32 %s1300_s20, %s1803_s11 }
  0x58   : > { %p1484_p4 = por %p54_p2, %p53_p1  ;;  %p39_p10 = scmp.ge.s32.totalorder %s1805_s12, 2 }
  0x59   : > { %p1782_p6 = scmp.ne.s32.totalorder %s1772_s26, 0  ;;  %p1003_p11 = scmp.lt.s32.totalorder %s1308_s22, 4 }
  0x5a   : > { %s205_s23 = sand.u32 1, %s1288_s17   ;;  %s1807_s12 = smov (%p39_p10, %s1805_s12), 0 }
  0x5b   : > { %p1490_p8 = por %p1782_p6, %p53_p1  ;;  %s812_s24 = sshll.u32 %s205_s23, 6 }
  0x5c   : > { %s41_s5 = ssub.s32 %s1304_s21, %s1807_s12  ;;  %s813_s28 = sshll.u32 %s1300_s20, 4 }
  0x5d   : > { %s43_s9 = sor.u32 %s42_s13, %s41_s5  ;;  %s814_s10 = sshll.u32 %s1304_s21, 5 }
  0x5e   : > { %p44_p13 = scmp.eq.s32.totalorder %s43_s9, 0  ;;  %s215_s30 = sadd.s32 %s814_s10, %s813_s28 }
  0x5f   : > { %s209_s7 = scalar_lea.vmem [#allocation2], %s812_s24  ;;  %s815_s2 = sshll.u32 %s215_s30, 6 }
  0x60   : > { %s218_s26 = sshll.u32 %s209_s7, 4  ;;  %s1510_s4 = scalar_lea.hbm %s1752_s0, %s815_s2  ;;  %s1505_s26 = int_to_ptr.vmem [resolvable:$true] %s218_s26 }
  0x61   : > { %s1503_s1 = scalar_select %p44_p13, %s1288_s17, %s46_s6  }
  0x62   : > { %p1516_p0 = pnand %p1003_p11, %p1484_p4  ;;  %s1520_s30 = scalar_lea.sflag [#allocation3], %s205_s23 }
  0x63   : > { %s1144_s7 = scalar_lea.hbm %s1510_s4, 1024  ;;  %s1149_s11 = scalar_lea.hbm %s1752_s0, 4096 }
  0x64   : > { %p1145_p3 = scmp.ne.s32.totalorder %s1510_s4, %s1144_s7  ;;  %p1146_p5 = pneg %p1516_p0 }
  0x65   : > { %p1150_p12 = scmp.lt.u32.totalorder %s1510_s4, %s1752_s0  ;;  %p1151_p1 = scmp.lt.u32.totalorder %s1149_s11, %s1144_s7 }
  0x66   : > { %p1147_p7 = pnand %p1146_p5, %p1145_p3  ;;  %p1153_p4 = scmp.lt.u32.totalorder %s1144_s7, %s1510_s4 }
  0x67   : > { %p1152_p2 = por %p1151_p1, %p1150_p12 }
  0x68   : > { %p1148_p9 = pneg %p1147_p7 }
  0x69   : > { %p1154_p10 = por %p1153_p4, %p1152_p2 }
  0x6b   : > { %p1155_p6 = pnand %p1154_p10, %p1148_p9 }
  0x6d   : > { %1158 = shalt.err (!%p1155_p6)
}
  0x6e   : > { %s1159_s23 = scalar_lea.vmem %s1505_s26, 1024  ;;  %s1314_s24 = smov [#allocation2]  }
  0x6f   : > { %p1160_p11 = scmp.ne.s32.totalorder %s1505_s26, %s1159_s23  ;;  %s1164_s5 = sshll.u32 %s1314_s24, 4  ;;  %s1165_s5 = int_to_ptr.vmem [resolvable:$false] %s1164_s5 }
  0x70   : > { %s1166_s9 = scalar_lea.vmem %s1165_s5, 2048  ;;  %p1167_p7 = scmp.lt.s32.totalorder %s1505_s26, %s1165_s5 }
  0x71   : > { %p1162_p13 = pnand %p1160_p11, %p1146_p5  ;;  %p1168_p12 = scmp.lt.s32.totalorder %s1166_s9, %s1159_s23 }
  0x73   : > { %p1163_p3 = pneg %p1162_p13  ;;  %p1169_p1 = por %p1168_p12, %p1167_p7 }
  0x75   : > { %p1170_p2 = pnand %p1169_p1, %p1163_p3 }
  0x77   : > { %1173 = shalt.err (!%p1170_p2)
}
  0x78   : > { %s1785_s28 = smov 4   ;;  %s1786_s10 = smov 64  }
  0x79   : > { %993 = dma.hbm_to_vmem [thread:$0]  (!%p1516_p0), %s1510_s4, 1024, %s1505_s26, %s1520_s30, %s1786_s10, %s1786_s10, %s1785_s28  }
  0x7a   : > { %p1787_p5 = scmp.ne.s32.totalorder %s1776_s29, 0 }
  0x7b   : > { %s1554_s7 = sand.u32 (!%p1787_p5), 1, %s1284_s16   ;;  %p1788_p9 = scmp.ne.s32.totalorder (!%p1787_p5), %s1773_s27, 0 }
  0x7c   : > { %230 = sbr.rel (%p1787_p5) target bundleno = 435 (0x1b3), region = 32  ;;  %s817_s2 = sshll.u32 (!%p1787_p5), %s1554_s7, 6 }
  0x7d   : > { %s233_s15 = scalar_lea.sflag (!%p1787_p5), [#allocation3], %s1554_s7  ;;  %s1560_s13 = scalar_lea.vmem (!%p1787_p5), [#allocation2], %s817_s2 }
  0x83   : > { %1263 = dma.done.wait (%p1788_p9), %s233_s15, 1024  }
  0x84   : > { %1265 = vsyncadd (%p1788_p9), %s233_s15, 4294966272  ;;  %p1789_p0 = scmp.ne.s32.totalorder %s1771_s25, 0 }
  0x86   : > { %1267 = dma.done.wait (%p1789_p0), [#allocation6], 400  }
  0x87   : > { %1269 = vsyncadd (%p1789_p0), [#allocation6], 4294966896  ;;  %v1077_v0 = vld [vmem:[#allocation5] sm:$0xff]   ;;  %v1078_v1 = vld [vmem:[#allocation5 + $0x8] sm:$0xff]   ;;  %vm364_vm0 = vcmask 392192   ;;  %s1610_s4 = scalar_lea.vmem [#allocation8], %s817_s2 }
  0x88   : > { %941 = vmatprep.subr.bf16.mxu0 %v1077_v0  ;;  %963 = vmatprep.subr.bf16.mxu1 %v1077_v0  ;;  %v1080_v2 = vld [vmem:[%s1560_s13] sm:$0xff]   ;;  %v1079_v3 = vld [vmem:[#allocation5 + $0x10] sm:$0xff]   ;;  %v1081_v5 = vld [vmem:[%s1560_s13 + $0x8] sm:$0xff]   ;;  %s860_s25 = sshll.u32 %s1292_s18, 4  ;;  %s861_s27 = sshll.u32 %s1296_s19, 5 }
  0x89   : > { %942 = vmatpush3.bf16.msra.mxu0 %v1077_v0  ;;  %966 = vmatpush3.bf16.msra.mxu1 %v1077_v0  ;;  %v1084_v4 = vld [vmem:[%s1560_s13 + $0x20] sm:$0xff]   ;;  %v1085_v6 = vld [vmem:[%s1560_s13 + $0x28] sm:$0xff]   ;;  %v1082_v7 = vld [vmem:[%s1560_s13 + $0x10] sm:$0xff]   ;;  %s645_s29 = sadd.s32 %s861_s27, %s860_s25  ;;  %s648_s26 = sshll.u32 %s1610_s4, 4  ;;  %s1638_s26 = int_to_ptr.vmem [resolvable:$true] %s648_s26 }
  0x8a   : > { %943 = vmatprep.subr.bf16.mxu0 %v1078_v1  ;;  %964 = vmatprep.subr.bf16.mxu1 %v1078_v1  ;;  %v1086_v8 = vld [vmem:[%s1560_s13 + $0x30] sm:$0xff]   ;;  %v1083_v9 = vld [vmem:[%s1560_s13 + $0x18] sm:$0xff]   ;;  %s862_s30 = sshll.u32 %s645_s29, 6  ;;  %s628_s23 = scalar_lea.sflag [#allocation4], %s1554_s7 }
  0x8b   : > { %947 = vmatprep.mubr.msk.bf16.mxu0 %vm364_vm0, %v1080_v2  ;;  %955 = vmatprep.mubr.msk.bf16.mxu1 %vm364_vm0, %v1084_v4  ;;  %v1087_v10 = vld [vmem:[%s1560_s13 + $0x38] sm:$0xff]   ;;  %s1644_s14 = scalar_lea.hbm %s1755_s3, %s862_s30  ;;  %s1174_s24 = scalar_lea.vmem %s1638_s26, 1024 }
  0x8c   : > { %v1586_v11 = vld [vmem:[#allocation7] ss:$0 sm:$0xff]  ;;  %p1175_p4 = scmp.ne.s32.totalorder %s1638_s26, %s1174_s24  ;;  %s1315_s5 = smov [#allocation8]  }
  0x8d   : > { %944 = vmatpush3.bf16.msra.mxu0 %v1078_v1  ;;  %967 = vmatpush3.bf16.msra.mxu1 %v1078_v1  ;;  %s1178_s9 = sshll.u32 %s1315_s5, 4  ;;  %s1179_s9 = int_to_ptr.vmem [resolvable:$false] %s1178_s9 }
  0x8e   : > { %945 = vmatprep.subr.bf16.mxu0 %v1079_v3  ;;  %965 = vmatprep.subr.bf16.mxu1 %v1079_v3  ;;  %p1176_p10 = pnand %p1175_p4, %p1490_p8  ;;  %s1180_s28 = scalar_lea.vmem %s1179_s9, 2048 }
  0x8f   : > { %p1181_p11 = scmp.lt.s32.totalorder %s1638_s26, %s1179_s9  ;;  %p1182_p13 = scmp.lt.s32.totalorder %s1180_s28, %s1174_s24 }
  0x90   : > { %p1177_p6 = pneg %p1176_p10 }
  0x91   : > { %946 = vmatpush3.bf16.msra.mxu0 %v1079_v3  ;;  %968 = vmatpush3.bf16.msra.mxu1 %v1079_v3  ;;  %p1183_p3 = por %p1182_p13, %p1181_p11 }
  0x93   : > { %p1184_p7 = pnand %p1183_p3, %p1177_p6 }
  0x94   : > { %948 = vmatmul.mubr.msk.bf16.vlgmr.msra.gmra.mrb[0].mxu0 %vm364_vm0, %v1081_v5  ;;  %956 = vmatmul.mubr.msk.bf16.vlgmr.msra.gmra.mrb[0].mxu1 %vm364_vm0, %v1085_v6 }
  0x95   : > { %951 = vmatprep.mubr.msk.bf16.mxu0 %vm364_vm0, %v1082_v7  ;;  %959 = vmatprep.mubr.msk.bf16.mxu1 %vm364_vm0, %v1086_v8 }
  0x9c   : > { %952 = vmatmul.mubr.msk.bf16.gmra.mrb[4].mxu0 %vm364_vm0, %v1083_v9  ;;  %960 = vmatmul.mubr.msk.bf16.gmra.mrb[4].mxu1 %vm364_vm0, %v1087_v10 }
 0x167   : > { %v949_v12 = vpop.f32.mrb[0].mxu0  ;;  %v957_v13 = vpop.f32.mrb[0].mxu1 }
 0x168   : > { %v423_v14 = vpop.f32.mrb[1].mxu0  ;;  %v1589_v15 = vadd.f32 %v957_v13, %v1586_v11  ;;  %v455_v16 = vpop.f32.mrb[1].mxu1  ;;  %v432_v21 = vadd.f32 %v949_v12, %v1586_v11 }
 0x169   : > { %v424_v17 = vadd.f32 %v1586_v11, %v423_v14  ;;  %v950_v18 = vpop.f32.mrb[2].mxu0  ;;  %v1593_v19 = vadd.f32 %v1586_v11, %v455_v16  ;;  %v958_v20 = vpop.f32.mrb[2].mxu1 }
 0x16a   : > { %v435_v22 = vadd.f32 %v950_v18, %v1586_v11  ;;  %v426_v23 = vpop.f32.mrb[3].mxu0  ;;  %v1598_v24 = vadd.f32 %v958_v20, %v1586_v11  ;;  %v458_v25 = vpop.f32.mrb[3].mxu1  ;;  %v589_v35 = vmul.f32 %v432_v21, %v432_v21 }
 0x16b   : > { %v427_v26 = vadd.f32 %v1586_v11, %v426_v23  ;;  %v1602_v27 = vadd.f32 %v1586_v11, %v458_v25  ;;  %v587_v28 = vmul.f32 %v424_v17, %v424_v17  ;;  %v595_v9 = vmul.f32 %v1593_v19, %v1593_v19 }
 0x16c   : > { %v891_v29 = vpack.c.bf16 %v435_v22, %v432_v21  ;;  %v911_v30 = vpack.c.bf16 %v1598_v24, %v1589_v15  ;;  %v590_v43 = vmul.f32 %v435_v22, %v435_v22 }
 0x16d   : > { %v886_v31 = vpack.c.bf16 %v427_v26, %v424_v17  ;;  %v566_v32 = vadd.f32 %v427_v26, %v424_v17  ;;  %v588_v33 = vmul.f32 %v427_v26, %v427_v26  ;;  %v906_v34 = vpack.c.bf16 %v1602_v27, %v1593_v19 }
 0x16e   : > { %923 = vst [vmem:[%s1610_s4 + $0x8] sm:$0xff] %v891_v29   ;;  %927 = vst [vmem:[%s1610_s4 + $0x28] sm:$0xff] %v911_v30  }
 0x16f   : > { %887 = vst [vmem:[%s1610_s4] sm:$0xff] %v886_v31   ;;  %v567_v36 = vadd.f32 %v566_v32, %v432_v21  ;;  %v603_v37 = vadd.f32 %v588_v33, %v587_v28  ;;  %v953_v38 = vpop.f32.mrb[4].mxu0  ;;  %926 = vst [vmem:[%s1610_s4 + $0x20] sm:$0xff] %v906_v34   ;;  %v961_v39 = vpop.f32.mrb[4].mxu1 }
 0x170   : > { %v439_v40 = vpop.f32.mrb[5].mxu0  ;;  %v1619_v41 = vadd.f32 %v961_v39, %v1586_v11  ;;  %v471_v42 = vpop.f32.mrb[5].mxu1  ;;  %v448_v49 = vadd.f32 %v953_v38, %v1586_v11 }
 0x171   : > { %v604_v44 = vadd.f32 %v603_v37, %v589_v35  ;;  %v440_v45 = vadd.f32 %v1586_v11, %v439_v40  ;;  %v568_v46 = vadd.f32 %v567_v36, %v435_v22  ;;  %v954_v47 = vpop.f32.mrb[6].mxu0  ;;  %v962_v48 = vpop.f32.mrb[6].mxu1  ;;  %v1629_v59 = vadd.f32 %v1586_v11, %v471_v42 }
 0x172   : > { %v451_v50 = vadd.f32 %v954_v47, %v1586_v11  ;;  %v442_v51 = vpop.f32.mrb[7].mxu0  ;;  %v1625_v52 = vadd.f32 %v962_v48, %v1586_v11  ;;  %v474_v53 = vpop.f32.mrb[7].mxu1  ;;  %v593_v2 = vmul.f32 %v448_v49, %v448_v49 }
 0x173   : > { %v569_v54 = vadd.f32 %v568_v46, %v440_v45  ;;  %v591_v55 = vmul.f32 %v440_v45, %v440_v45  ;;  %v605_v56 = vadd.f32 %v604_v44, %v590_v43  ;;  %v443_v57 = vadd.f32 %v1586_v11, %v442_v51 }
 0x174   : > { %v901_v58 = vpack.c.bf16 %v451_v50, %v448_v49  ;;  %v921_v60 = vpack.c.bf16 %v1625_v52, %v1619_v41  ;;  %v475_v1 = vadd.f32 %v1586_v11, %v474_v53  ;;  %v594_v6 = vmul.f32 %v451_v50, %v451_v50 }
 0x175   : > { %v606_v61 = vadd.f32 %v605_v56, %v591_v55  ;;  %v896_v62 = vpack.c.bf16 %v443_v57, %v440_v45  ;;  %v570_v63 = vadd.f32 %v569_v54, %v443_v57  ;;  %v592_v0 = vmul.f32 %v443_v57, %v443_v57 }
 0x176   : > { %925 = vst [vmem:[%s1610_s4 + $0x18] sm:$0xff] %v901_v58   ;;  %929 = vst [vmem:[%s1610_s4 + $0x38] sm:$0xff] %v921_v60   ;;  %v916_v5 = vpack.c.bf16 %v475_v1, %v1629_v59 }
 0x177   : > { %924 = vst [vmem:[%s1610_s4 + $0x10] sm:$0xff] %v896_v62   ;;  %v571_v3 = vadd.f32 %v570_v63, %v448_v49  ;;  %v607_v4 = vadd.f32 %v606_v61, %v592_v0 }
 0x178   : > { %928 = vst [vmem:[%s1610_s4 + $0x30] sm:$0xff] %v916_v5  }
 0x179   : > { %v608_v7 = vadd.f32 %v607_v4, %v593_v2  ;;  %v572_v8 = vadd.f32 %v571_v3, %v451_v50 }
 0x17b   : > { %v573_v10 = vadd.f32 %v572_v8, %v1593_v19  ;;  %v609_v11 = vadd.f32 %v608_v7, %v594_v6 }
 0x17c   : > { %1187 = shalt.err (!%p1184_p7)
}
 0x17d   : > { %s1188_s10 = scalar_lea.hbm %s1644_s14, 1024  ;;  %s1192_s13 = scalar_lea.hbm %s1755_s3, 4096 }
 0x17e   : > { %p1189_p12 = scmp.ne.s32.totalorder %s1644_s14, %s1188_s10  ;;  %p1193_p5 = scmp.lt.u32.totalorder %s1644_s14, %s1755_s3 }
 0x17f   : > { %p1194_p9 = scmp.lt.u32.totalorder %s1192_s13, %s1188_s10  ;;  %p1196_p4 = scmp.lt.u32.totalorder %s1188_s10, %s1644_s14 }
 0x180   : > { %p1190_p1 = pnand %p1189_p12, %p1490_p8 }
 0x181   : > { %p1195_p0 = por %p1194_p9, %p1193_p5 }
 0x182   : > { %p1191_p2 = pneg %p1190_p1 }
 0x183   : > { %p1197_p10 = por %p1196_p4, %p1195_p0 }
 0x185   : > { %p1198_p6 = pnand %p1197_p10, %p1191_p2 }
 0x187   : > { %1201 = shalt.err (!%p1198_p6)
}
 0x188   : > { %s1316_s27 = smov 64   ;;  %s1317_s29 = smov 4   ;;  %v610_v12 = vadd.f32 %v609_v11, %v595_v9  ;;  %v574_v13 = vadd.f32 %v573_v10, %v1602_v27  ;;  %v596_v14 = vmul.f32 %v1602_v27, %v1602_v27  ;;  %v597_v16 = vmul.f32 %v1589_v15, %v1589_v15 }
 0x189   : > { %979 = dma.vmem_to_hbm [thread:$0]  (%p1490_p8), %s1638_s26, 1024, %s1644_s14, %s628_s23, %s1316_s27, %s1316_s27, %s1317_s29   ;;  %v598_v19 = vmul.f32 %v1598_v24, %v1598_v24  ;;  %v599_v22 = vmul.f32 %v1629_v59, %v1629_v59  ;;  %v600_v28 = vmul.f32 %v475_v1, %v475_v1  ;;  %vm624_vm1 = vcmask 1040384  }
 0x18a   : > { %v575_v17 = vadd.f32 %v574_v13, %v1589_v15  ;;  %v611_v18 = vadd.f32 %v610_v12, %v596_v14  ;;  %v601_v15 = vmul.f32 %v1619_v41, %v1619_v41  ;;  %s821_s26 = sshll.u32 %s1554_s7, 1  ;;  %s863_s30 = sshll.u32 %s1296_s19, 1 }
 0x18b   : > { %s662_s11 = sadd.s32 %s1292_s18, %s863_s30  ;;  %s273_s14 = scalar_lea.vmem [#allocation9], %s821_s26 }
 0x18c   : > { %v612_v20 = vadd.f32 %v611_v18, %v597_v16  ;;  %v576_v21 = vadd.f32 %v575_v17, %v1598_v24  ;;  %v602_v24 = vmul.f32 %v1625_v52, %v1625_v52  ;;  %s864_s6 = sshll.u32 %s662_s11, 5  ;;  %s666_s23 = sshll.u32 %s273_s14, 4  ;;  %s1700_s23 = int_to_ptr.vmem [resolvable:$true] %s666_s23 }
 0x18d   : > { %s1790_s9 = sld [smem:[#allocation20_spill]]  ;;  %s633_s18 = scalar_lea.sflag [#allocation10], %s1554_s7 }
 0x18e   : > { %v577_v23 = vadd.f32 %v576_v21, %v1629_v59  ;;  %v613_v25 = vadd.f32 %v612_v20, %v598_v19  ;;  %s1202_s19 = scalar_lea.vmem %s1700_s23, 32  ;;  %s1318_s10 = smov [#allocation9]  }
 0x18f   : > { %p1203_p11 = scmp.ne.s32.totalorder %s1700_s23, %s1202_s19  ;;  %s1206_s2 = sshll.u32 %s1318_s10, 4  ;;  %s1207_s2 = int_to_ptr.vmem [resolvable:$false] %s1206_s2 }
 0x190   : > { %v614_v26 = vadd.f32 %v613_v25, %v599_v22  ;;  %v578_v27 = vadd.f32 %v577_v23, %v475_v1  ;;  %s1208_s15 = scalar_lea.vmem %s1207_s2, 64  ;;  %p1209_p7 = scmp.lt.s32.totalorder %s1700_s23, %s1207_s2 }
 0x191   : > { %p1204_p13 = pnand %p1203_p11, %p1490_p8  ;;  %p1210_p12 = scmp.lt.s32.totalorder %s1208_s15, %s1202_s19 }
 0x192   : > { %v579_v29 = vadd.f32 %v578_v27, %v1619_v41  ;;  %v615_v30 = vadd.f32 %v614_v26, %v600_v28 }
 0x193   : > { %s1698_s28 = scalar_lea.hbm %s1790_s9, %s864_s6  ;;  %p1205_p3 = pneg %p1204_p13 }
 0x194   : > { %v580_v31 = vadd.f32 %v579_v29, %v1625_v52  ;;  %v616_v32 = vadd.f32 %v615_v30, %v601_v15  ;;  %p1211_p1 = por %p1210_p12, %p1209_p7 }
 0x196   : > { %v581_v33 = vrot.slane %v580_v31, 4  ;;  %v617_v34 = vadd.f32 %v616_v32, %v602_v24  ;;  %p1212_p2 = pnand %p1211_p1, %p1205_p3 }
 0x198   : > { %v582_v35 = vadd.f32 %v581_v33, %v580_v31  ;;  %v618_v36 = vrot.slane %v617_v34, 4 }
 0x19a   : > { %v583_v37 = vrot.slane %v582_v35, 2  ;;  %v619_v38 = vadd.f32 %v618_v36, %v617_v34 }
 0x19c   : > { %v584_v39 = vadd.f32 %v583_v37, %v582_v35  ;;  %v620_v40 = vrot.slane %v619_v38, 2 }
 0x19e   : > { %v585_v41 = vrot.slane %v584_v39, 1  ;;  %v621_v42 = vadd.f32 %v620_v40, %v619_v38 }
 0x1a0   : > { %v622_v43 = vrot.slane %v621_v42, 1  ;;  %v586_v44 = vadd.f32 %v585_v41, %v584_v39 }
 0x1a2   : > { %v623_v45 = vadd.f32 %v622_v43, %v621_v42 }
 0x1a4   : > { %v625_v46 = vsel %vm624_vm1, %v586_v44, %v623_v45 }
 0x1a5   : > { %626 = vst [vmem:[%s273_s14] sm:$0x3] %v625_v46 }
 0x1a6   : > { %1215 = shalt.err (!%p1212_p2)
}
 0x1a7   : > { %s1216_s7 = scalar_lea.hbm %s1698_s28, 32  ;;  %s1220_s25 = scalar_lea.hbm %s1790_s9, 128 }
 0x1a8   : > { %p1217_p5 = scmp.ne.s32.totalorder %s1698_s28, %s1216_s7  ;;  %p1221_p4 = scmp.lt.u32.totalorder %s1698_s28, %s1790_s9 }
 0x1a9   : > { %p1222_p10 = scmp.lt.u32.totalorder %s1220_s25, %s1216_s7  ;;  %p1224_p11 = scmp.lt.u32.totalorder %s1216_s7, %s1698_s28 }
 0x1aa   : > { %p1218_p9 = pnand %p1217_p5, %p1490_p8 }
 0x1ab   : > { %p1223_p6 = por %p1222_p10, %p1221_p4 }
 0x1ac   : > { %p1219_p0 = pneg %p1218_p9 }
 0x1ad   : > { %p1225_p13 = por %p1224_p11, %p1223_p6 }
 0x1af   : > { %p1226_p3 = pnand %p1225_p13, %p1219_p0 }
 0x1b1   : > { %1229 = shalt.err (!%p1226_p3)
}
 0x1b2   : > { %980 = dma.vmem_to_hbm [thread:$0]  (%p1490_p8), %s1700_s23, 32, %s1698_s28, %s633_s18  }
 0x1b3 PF: > { %s1791_s26 = sld [smem:[#allocation15_spill]]  ;;  %s1792_s30 = sld [smem:[#allocation16_spill]] }
 0x1b4   : > { %p1006_p7 = scmp.ge.s32.totalorder %s1308_s22, 2 }
 0x1b9   : > { %s678_s11 = sand.u32 1, %s1791_s26   ;;  %p1793_p12 = scmp.ne.s32.totalorder %s1792_s30, 0 }
 0x1ba   : > { %s679_s6 = scalar_lea.sflag [#allocation4], %s678_s11 }
 0x1bb   : > { %p995_p1 = pnand %p1006_p7, %p1793_p12 }
 0x1bd   : > { %1271 = dma.done.wait (!%p995_p1), %s679_s6, 1024  }
 0x1be   : > { %1273 = vsyncadd (!%p995_p1), %s679_s6, 4294966272  ;;  %s688_s14 = scalar_lea.sflag [#allocation10], %s678_s11 }
 0x1bf   : > { %1275 = dma.done.wait (!%p995_p1), %s688_s14, 32  }
 0x1c0   : > { %1277 = vsyncadd (!%p995_p1), %s688_s14, 4294967264  ;;  %s25_s22 = sadd.s32 1, %s1308_s22   ;;  %s1794_s8 = sld [smem:[#allocation17_spill]] }
 0x1c1   : > { %p22_p2 = scmp.ge.s32.totalorder %s25_s22, 6   ;;  %s1795_s15 = smov %s1284_s16 }
 0x1c2   : > { %s1796_s16 = smov %s1288_s17  ;;  %s1797_s17 = smov %s1503_s1 }
 0x1c3   : > { %s1798_s18 = smov %s1300_s20  ;;  %s1799_s19 = smov %s1304_s21 }
 0x1c4   : > { %s1801_s21 = smov %s1807_s12  ;;  %24 = sbr.rel (!%p22_p2) target bundleno = 14 (0xe), region = 102 }
 0x1c6   : > { %s1800_s20 = smov %s1794_s8 }
 0x1cb   :  { %693 = vsyncpa [#allocation3], 1 }
 0x1cc   :  { %695 = vsyncpa [#allocation3 + $0x1], 1 }
 0x1cd   :  { %696 = vsyncpa [#allocation6], 1 }
 0x1ce   :  { %697 = vsyncpa [#allocation4], 1 }
 0x1cf   :  { %699 = vsyncpa [#allocation4 + $0x1], 1 }
 0x1d0   :  { %700 = vsyncpa [#allocation10], 1 }
 0x1d1   :  { %702 = vsyncpa [#allocation10 + $0x1], 1 }

</bundles_post_ra>
